<compile_context>
chip_gen: v5e
topology: v5e:2x2
jax: 0.10.0
libtpu: 0.0.40
codegen_flags: <defaults>
</compile_context>

<pallas_src>
import jax
import jax.numpy as jnp
import numpy as np
from jax.experimental import pallas as pl
from jax.experimental.pallas import tpu as pltpu


def _round_up(v, m):
    return ((v + m - 1) // m) * m


# ---------------------------------------------------------------------------
# Kernels
# ---------------------------------------------------------------------------

def _fuzzify_var_kernel(x_ref, mu_ref, nis_ref, bias_ref, o_ref):
    # x_ref:    (1, TC)   input cases on the 128-lane axis
    # mu_ref:   (M, 1)    Gaussian centers (grid-invariant)
    # nis_ref:  (M, 1)    -1/(2*sigma^2)
    # bias_ref: (M, 1)    0.0 for real MFs, -1e30 for padded rows (exp -> 0)
    # o_ref:    (M, TC)   lane-dense membership values
    x = x_ref[...]                              # (1, TC)
    d = x - mu_ref[...]                         # broadcast -> (M, TC)
    e = d * d * nis_ref[...] + bias_ref[...]    # exponent <= 0
    o_ref[...] = jnp.exp(e).astype(o_ref.dtype)


def _fuzzify_layer_kernel(x_ref, mu_ref, nis_ref, bias_ref, o_ref):
    # Whole FuzzifyLayer in one launch.
    # x_ref: (V, 1, TC), mu/nis/bias: (V, M, 1), o_ref: (V, M, TC)
    x = x_ref[...]
    d = x - mu_ref[...]
    e = d * d * nis_ref[...] + bias_ref[...]
    o_ref[...] = jnp.exp(e).astype(o_ref.dtype)


# ---------------------------------------------------------------------------
# Parameter packing (static module parameters -> do this ONCE, outside the
# per-forward jit, and reuse; kept as a separate function for that reason).
# ---------------------------------------------------------------------------

def pack_gaussian_params(mu, sigma, padding=0, m_align=8):
    """Return (mu_col, nis_col, bias_col, m_total, m_kernel).

    Columns have shape (m_kernel, 1) with m_kernel = round_up(n_mfs+padding, 8)
    so the kernel's output tile keeps clean (8,128) sublane layout.  Extra
    rows (both user padding and alignment padding) get bias = -1e30 so
    exp() flushes them to exactly 0.0.
    """
    mu = jnp.asarray(mu, jnp.float32)
    sigma = jnp.asarray(sigma, jnp.float32)
    n_mfs = int(mu.shape[0])
    m_total = n_mfs + int(padding)
    m_kernel = max(m_align, _round_up(m_total, m_align))
    pad = m_kernel - n_mfs
    nis = -1.0 / (2.0 * sigma * sigma)
    mu_col = jnp.pad(mu, (0, pad)).reshape(m_kernel, 1)
    nis_col = jnp.pad(nis, (0, pad)).reshape(m_kernel, 1)
    bias_col = jnp.pad(jnp.zeros((n_mfs,), jnp.float32), (0, pad),
                       constant_values=-1e30).reshape(m_kernel, 1)
    return mu_col, nis_col, bias_col, m_total, m_kernel


def _pick_case_tile(n_cases, tile_cases):
    tc = min(int(tile_cases), int(n_cases))
    if n_cases >= 1024:
        # Ensure >= 2 grid steps so v7x's two TensorCores both get work
        # ("parallel" only shards if the axis has >= 2 steps).
        tc = min(tc, _round_up(-(-n_cases // 2), 128))
    return max(128, _round_up(tc, 128))


# ---------------------------------------------------------------------------
# Public wrappers
# ---------------------------------------------------------------------------

def fuzzify_variable(x, mu, sigma, padding=0, *, tile_cases=16384,
                     out_dtype=jnp.float32, transposed=False):
    """FuzzifyVariable.forward for Gaussian MFs.

    x:       (n_cases, 1) float
    mu:      (n_mfs,)     Gaussian centers
    sigma:   (n_mfs,)     Gaussian widths
    padding: extra zero columns appended (FuzzifyVariable.pad_to)
    out_dtype: jnp.float32 (exact module match) or jnp.bfloat16 (halves the
               HBM writeback; exponent math stays f32).
    transposed: True returns the lane-dense (n_mfs+padding, n_cases) layout
                directly (preferred for fused downstream rule kernels — the
                module-layout path costs an extra HBM transpose pass).
    """
    n_cases = int(x.shape[0])
    mu_col, nis_col, bias_col, m_total, m_kernel = pack_gaussian_params(
        mu, sigma, padding)
    x_row = jnp.asarray(x, jnp.float32).reshape(1, n_cases)

    tc = _pick_case_tile(n_cases, tile_cases)
    grid = (pl.cdiv(n_cases, tc),)

    out = pl.pallas_call(
        _fuzzify_var_kernel,
        out_shape=jax.ShapeDtypeStruct((m_kernel, n_cases), out_dtype),
        grid_spec=pltpu.PrefetchScalarGridSpec(
            num_scalar_prefetch=0,
            grid=grid,
            in_specs=[
                pl.BlockSpec((1, tc), lambda i: (0, i)),
                pl.BlockSpec((m_kernel, 1), lambda i: (0, 0)),
                pl.BlockSpec((m_kernel, 1), lambda i: (0, 0)),
                pl.BlockSpec((m_kernel, 1), lambda i: (0, 0)),
            ],
            out_specs=pl.BlockSpec((m_kernel, tc), lambda i: (0, i)),
        ),
        compiler_params=pltpu.CompilerParams(
            dimension_semantics=("parallel",)),
    )(x_row, mu_col, nis_col, bias_col)

    if m_kernel != m_total:
        out = out[:m_total]
    if transposed:
        return out          # (m_total, n_cases), lane-dense
    return out.T            # (n_cases, m_total), matches the PyTorch module


def fuzzify_layer(x, mus, sigmas, *, pad_to=None, tile_cases=16384,
                  out_dtype=jnp.float32, transposed=True):
    """Batched FuzzifyLayer-style forward: ALL variables in ONE pallas_call.

    x: (n_cases, n_vars); mus/sigmas: per-variable (n_mfs_v,) arrays.
    Each variable is padded (with zero membership columns) up to
    max(pad_to, max_v n_mfs_v), like FuzzifyLayer's pad_to.
    transposed=True (default) returns the lane-dense (n_vars, m_max, n_cases)
    layout; False returns (n_cases, n_vars, m_max) like torch.stack would.
    """
    n_cases, n_vars = int(x.shape[0]), int(x.shape[1])
    assert len(mus) == n_vars and len(sigmas) == n_vars
    m_max = max(int(np.asarray(m).shape[0]) for m in mus)
    if pad_to is not None:
        m_max = max(m_max, int(pad_to))
    m_kernel = max(8, _round_up(m_max, 8))

    # Static parameter pack (host-side, do once per model).
    mu_stack = np.zeros((n_vars, m_kernel, 1), np.float32)
    nis_stack = np.zeros((n_vars, m_kernel, 1), np.float32)
    bias_stack = np.full((n_vars, m_kernel, 1), -1e30, np.float32)
    for v, (m, s) in enumerate(zip(mus, sigmas)):
        m = np.asarray(m, np.float32)
        s = np.asarray(s, np.float32)
        k = m.shape[0]
        mu_stack[v, :k, 0] = m
        nis_stack[v, :k, 0] = -1.0 / (2.0 * s * s)
        bias_stack[v, :k, 0] = 0.0

    x_t = jnp.asarray(x, jnp.float32).T.reshape(n_vars, 1, n_cases)

    tc = _pick_case_tile(n_cases, tile_cases)
    grid = (pl.cdiv(n_cases, tc),)

    out = pl.pallas_call(
        _fuzzify_layer_kernel,
        out_shape=jax.ShapeDtypeStruct((n_vars, m_kernel, n_cases), out_dtype),
        grid_spec=pltpu.PrefetchScalarGridSpec(
            num_scalar_prefetch=0,
            grid=grid,
            in_specs=[
                pl.BlockSpec((n_vars, 1, tc), lambda i: (0, 0, i)),
                pl.BlockSpec((n_vars, m_kernel, 1), lambda i: (0, 0, 0)),
                pl.BlockSpec((n_vars, m_kernel, 1), lambda i: (0, 0, 0)),
                pl.BlockSpec((n_vars, m_kernel, 1), lambda i: (0, 0, 0)),
            ],
            out_specs=pl.BlockSpec((n_vars, m_kernel, tc),
                                   lambda i: (0, 0, i)),
        ),
        compiler_params=pltpu.CompilerParams(
            dimension_semantics=("parallel",)),
    )(x_t, jnp.asarray(mu_stack), jnp.asarray(nis_stack),
      jnp.asarray(bias_stack))

    if m_kernel != m_max:
        out = out[:, :m_max]
    if transposed:
        return out                              # (n_vars, m_max, n_cases)
    return jnp.transpose(out, (2, 0, 1))        # (n_cases, n_vars, m_max)
    # TODO(synk): the downstream AntecedentLayer rule-product could also be
    # fused into this same kernel for a further launch/HBM saving.


if __name__ == "__main__":
    key = jax.random.PRNGKey(0)

    # --- single variable (module-equivalent), small shapes: n_cases=16,
    #     n_mfs=5 Gaussians, pad_to(8). -----------------------------------
    n_cases, n_mfs, pad_to_n = 16, 5, 8
    padding = pad_to_n - n_mfs
    x = jax.random.normal(key, (n_cases, 1), dtype=jnp.float32)
    mu = jnp.linspace(-2.0, 2.0, n_mfs).astype(jnp.float32)
    sigma = 1.0 + 0.1 * jnp.arange(n_mfs, dtype=jnp.float32)

    y = jax.block_until_ready(fuzzify_variable(x, mu, sigma, padding=padding))
    x_np = np.asarray(x)
    mu_np = np.asarray(mu)[None, :]
    sg_np = np.asarray(sigma)[None, :]
    ref_core = np.exp(-((x_np - mu_np) ** 2) / (2.0 * sg_np ** 2))
    ref = np.concatenate(
        [ref_core, np.zeros((n_cases, padding), np.float32)], axis=1)
    assert y.shape == (n_cases, pad_to_n), y.shape
    np.testing.assert_allclose(np.asarray(y), ref, rtol=1e-5, atol=1e-5)

    # --- multi-step grid + ragged edge tile + lane-dense output path -----
    n_cases2 = 1000
    x2 = jax.random.normal(jax.random.PRNGKey(1), (n_cases2, 1), jnp.float32)
    y2 = jax.block_until_ready(
        fuzzify_variable(x2, mu, sigma, padding=padding, tile_cases=256,
                         transposed=True))
    assert y2.shape == (pad_to_n, n_cases2), y2.shape
    x2_np = np.asarray(x2)
    ref2_core = np.exp(-((x2_np - mu_np) ** 2) / (2.0 * sg_np ** 2))
    ref2 = np.concatenate(
        [ref2_core, np.zeros((n_cases2, padding), np.float32)], axis=1).T
    np.testing.assert_allclose(np.asarray(y2), ref2, rtol=1e-5, atol=1e-5)

    # --- bf16 output (halves HBM writeback; exponent math stays f32) -----
    y3 = jax.block_until_ready(
        fuzzify_variable(x2, mu, sigma, padding=padding,
                         out_dtype=jnp.bfloat16, transposed=True))
    np.testing.assert_allclose(np.asarray(y3, dtype=np.float32), ref2,
                               rtol=1e-2, atol=1e-2)

    # --- whole FuzzifyLayer batched into a single pallas_call -------------
    n_vars = 3
    xl = jax.random.normal(jax.random.PRNGKey(2), (n_cases2, n_vars),
                           jnp.float32)
    mus = [jnp.linspace(-2.0, 2.0, 3 + v).astype(jnp.float32)
           for v in range(n_vars)]
    sigmas = [1.0 + 0.2 * jnp.arange(3 + v, dtype=jnp.float32)
              for v in range(n_vars)]
    yl = jax.block_until_ready(fuzzify_layer(xl, mus, sigmas,
                                             pad_to=pad_to_n))
    assert yl.shape == (n_vars, pad_to_n, n_cases2), yl.shape
    xl_np = np.asarray(xl)
    yl_np = np.asarray(yl)
    for v in range(n_vars):
        mv = np.asarray(mus[v])[None, :]
        sv = np.asarray(sigmas[v])[None, :]
        refv = np.exp(-((xl_np[:, v:v + 1] - mv) ** 2) / (2.0 * sv ** 2))
        np.testing.assert_allclose(yl_np[v, :mv.shape[1]].T, refv,
                                   rtol=1e-5, atol=1e-5)
        np.testing.assert_allclose(yl_np[v, mv.shape[1]:], 0.0)

    print("KERNEL_OK")
</pallas_src>

<mosaic_0001>
module attributes {stable_mosaic.version = 11 : i64} {
  func.func @_fuzzify_var_kernel(%arg0: i32, %arg1: memref<1x128xf32, #tpu.memory_space<vmem>>, %arg2: memref<8x1xf32, #tpu.memory_space<vmem>>, %arg3: memref<8x1xf32, #tpu.memory_space<vmem>>, %arg4: memref<8x1xf32, #tpu.memory_space<vmem>>, %arg5: memref<8x128xf32, #tpu.memory_space<vmem>>) attributes {dimension_semantics = [#tpu.dimension_semantics<parallel>], iteration_bounds = array<i64: 1>, scalar_prefetch = 0 : i64, scratch_operands = 0 : i64, tpu.core_type = #tpu.core_type<tc>, window_params = [{transform_indices = @transform_0, window_bounds = array<i64: 1, 128>}, {pipeline_mode = #tpu.pipeline_mode<synchronous>, transform_indices = @transform_1, window_bounds = array<i64: 8, 1>}, {pipeline_mode = #tpu.pipeline_mode<synchronous>, transform_indices = @transform_2, window_bounds = array<i64: 8, 1>}, {pipeline_mode = #tpu.pipeline_mode<synchronous>, transform_indices = @transform_3, window_bounds = array<i64: 8, 1>}, {transform_indices = @transform_4, window_bounds = array<i64: 8, 128>}]} {
    %c0 = arith.constant 0 : index
    %c0_0 = arith.constant 0 : index
    %0 = vector.load %arg1[%c0, %c0_0] : memref<1x128xf32, #tpu.memory_space<vmem>>, vector<1x128xf32>
    %c0_1 = arith.constant 0 : index
    %c0_2 = arith.constant 0 : index
    %1 = vector.load %arg2[%c0_1, %c0_2] : memref<8x1xf32, #tpu.memory_space<vmem>>, vector<8x1xf32>
    %2 = vector.broadcast %0 : vector<1x128xf32> to vector<8x128xf32>
    %3 = vector.broadcast %1 : vector<8x1xf32> to vector<8x128xf32>
    %4 = arith.subf %2, %3 : vector<8x128xf32>
    %5 = arith.mulf %4, %4 : vector<8x128xf32>
    %c0_3 = arith.constant 0 : index
    %c0_4 = arith.constant 0 : index
    %6 = vector.load %arg3[%c0_3, %c0_4] : memref<8x1xf32, #tpu.memory_space<vmem>>, vector<8x1xf32>
    %7 = vector.broadcast %6 : vector<8x1xf32> to vector<8x128xf32>
    %8 = arith.mulf %5, %7 : vector<8x128xf32>
    %c0_5 = arith.constant 0 : index
    %c0_6 = arith.constant 0 : index
    %9 = vector.load %arg4[%c0_5, %c0_6] : memref<8x1xf32, #tpu.memory_space<vmem>>, vector<8x1xf32>
    %10 = vector.broadcast %9 : vector<8x1xf32> to vector<8x128xf32>
    %11 = arith.addf %8, %10 : vector<8x128xf32>
    %12 = math.exp %11 : vector<8x128xf32>
    %c0_7 = arith.constant 0 : index
    %c0_8 = arith.constant 0 : index
    %13 = vector.load %arg5[%c0_7, %c0_8] : memref<8x128xf32, #tpu.memory_space<vmem>>, vector<8x128xf32>
    tpu.vector_store %arg5[%c0_7, %c0_8], %12 {strides = array<i32>} : memref<8x128xf32, #tpu.memory_space<vmem>>, vector<8x128xf32>,
    return
  }
  func.func @transform_0(%arg0: i32) -> (i32, i32) {
    %c0_i32 = arith.constant 0 : i32
    %c0_i32_0 = arith.constant 0 : i32
    return %c0_i32, %arg0 : i32, i32
  }
  func.func @transform_1(%arg0: i32) -> (i32, i32) {
    %c0_i32 = arith.constant 0 : i32
    %c0_i32_0 = arith.constant 0 : i32
    %c0_i32_1 = arith.constant 0 : i32
    return %c0_i32, %c0_i32_0 : i32, i32
  }
  func.func @transform_2(%arg0: i32) -> (i32, i32) {
    %c0_i32 = arith.constant 0 : i32
    %c0_i32_0 = arith.constant 0 : i32
    %c0_i32_1 = arith.constant 0 : i32
    return %c0_i32, %c0_i32_0 : i32, i32
  }
  func.func @transform_3(%arg0: i32) -> (i32, i32) {
    %c0_i32 = arith.constant 0 : i32
    %c0_i32_0 = arith.constant 0 : i32
    %c0_i32_1 = arith.constant 0 : i32
    return %c0_i32, %c0_i32_0 : i32, i32
  }
  func.func @transform_4(%arg0: i32) -> (i32, i32) {
    %c0_i32 = arith.constant 0 : i32
    %c0_i32_0 = arith.constant 0 : i32
    return %c0_i32, %arg0 : i32, i32
  }
}

</mosaic_0001>

<bundles_post_ra>
// kernel: tpu_custom_call.1
= control target key start
LH: loop header
LB: loop body
LE: loop exit
PB: predicated region body
PF: predicated region fallthrough
CT: control target
= control target key end

     0   :  { %v96_v2 = vmov 0   ;;  %s138_s0 = inlined_call_operand.vmem [shape: f32[1,16], index: 0, kind: input, shape index: {}]   ;;  %s139_s1 = inlined_call_operand.vmem [shape: f32[8,1], index: 1, kind: input, shape index: {}]   ;;  %s140_s2 = inlined_call_operand.vmem [shape: f32[8,1], index: 2, kind: input, shape index: {}]   ;;  %s141_s3 = inlined_call_operand.vmem [shape: f32[8,1], index: 3, kind: input, shape index: {}]   ;;  %s142_s4 = inlined_call_operand.hbm [shape: f32[8,16], index: 4, kind: output, shape index: {}]  }
   0x1   :  { %v19_v0 = vld [vmem:[%s139_s1] sm:$0xff]  ;;  %65 = vset.pattern.permute.xlu0 %v96_v2  ;;  %66 = vset.pattern.permute.xlu1 %v96_v2 }
   0x2   :  { %v37_v1 = vld [vmem:[%s141_s3] sm:$0xff] }
   0x3   :  { %9 = vsyncpa [#allocation3], 0  ;;  %25 = vperm.xlu0 %65, %v19_v0   ;;  %40 = vperm.xlu1 %66, %v37_v1   ;;  %v30_v3 = vld [vmem:[%s140_s2] sm:$0xff]  ;;  %s97_s1 = smov [#allocation2]   ;;  %s54_s2 = sshll.u32 %s142_s4, 4  ;;  %s55_s2 = int_to_ptr.hbm [resolvable:$true] %s54_s2 }
   0x4   :  { %v67_v4 = vld [vmem:[%s138_s0] ss:$0 sm:$0xff]  ;;  %s52_s3 = sshll.u32 %s97_s1, 4  ;;  %s53_s3 = int_to_ptr.vmem [resolvable:$true] %s52_s3 }
   0xb   :  { %33 = vperm.xlu0 %65, %v30_v3  }
  0x75   :  { %v26_v5 = vpop.permute.xlu0 %25  ;;  %v41_v9 = vpop.permute.xlu1 %40 }
  0x76   :  { %v28_v6 = vsub.f32 %v67_v4, %v26_v5 }
  0x78   :  { %v29_v7 = vmul.f32 %v28_v6, %v28_v6 }
  0x7d   :  { %v34_v8 = vpop.permute.xlu0 %33 }
  0x7e   :  { %v36_v10 = vmul.f32 %v34_v8, %v29_v7 }
  0x80   :  { %v43_v11 = vadd.f32 %v41_v9, %v36_v10 }
  0x82   :  { %v44_v12 = vmul.f32 1.442695, %v43_v11 }
  0x84   :  { %68 = vpow2.f32 %v44_v12 }
  0x8a   :  { %v69_v13 = vpop.eup %68 }
  0x8b   :  { %46 = vst [vmem:[#allocation2] sm:$0xff] %v69_v13 }
  0x8c   :  { %57 = dma.vmem_to_hbm [thread:$0]  %s53_s3, 128, %s55_s2, [#allocation3]  }
  0x8d   :  { %94 = dma.done.wait [#allocation3], 128  }
  0x8e   :  { %95 = vsyncadd [#allocation3], 4294967168 }
  0x8f   :  { %62 = vsyncpa [#allocation3], 1 }

</bundles_post_ra>
